<compile_context>
chip_gen: v6e
topology: v6e:2x2x1
jax: 0.10.0
libtpu: 0.0.40
codegen_flags: <defaults>
</compile_context>

<pallas_src>
import functools

import jax
import jax.numpy as jnp
from jax.experimental import pallas as pl
from jax.experimental.pallas import tpu as pltpu

ALPHA = 1.0   # module default
GAMMA = 3.0   # module default (small static integer -> chained multiplies)

LANES = 128
MIN_BLOCK_ROWS = 2048       # ~1 MiB of f32 per input per block


# --------------------------------------------------------------------------
# Chip / tiling configuration
# --------------------------------------------------------------------------
@functools.lru_cache(maxsize=None)
def _chip_config():
    """(target_block_rows, multi_core) for the local TPU generation."""
    try:
        kind = jax.devices()[0].device_kind.lower()
    except Exception:  # pragma: no cover - defensive
        kind = ""
    is_v7 = ("v7" in kind) or ("tpu7" in kind) or ("7x" in kind)
    if is_v7:
        # 3.2 TB/s per TC: use 2 MiB blocks and shard across the 2 TensorCores.
        return 4096, True
    # v5e / v6e (single TensorCore).  2048 rows = 1 MiB f32 per input block,
    # comfortably inside v5e's 16 MiB scoped-VMEM default even with an output.
    return 2048, False


def _sublane_granule(*dtypes):
    """Row granule so blocks respect (8,128)/(16,128)/(32,128) tiling."""
    g = 8
    for d in dtypes:
        itemsize = jnp.dtype(d).itemsize
        g = max(g, 32 // max(1, min(4, itemsize)))
    return g


def _choose_block_rows(rows, target_rows, granule, multi_core):
    rup = lambda v, m: -(-v // m) * m
    if (not multi_core) or rows < 2 * MIN_BLOCK_ROWS:
        return min(rup(target_rows, granule), max(granule, rup(rows, granule)))
    # Multi-core chip with enough work: even number of balanced blocks so both
    # TensorCores get (nearly) equal slices of the "parallel" grid axis.
    nb = max(2, -(-rows // target_rows))
    nb += nb % 2
    return max(granule, rup(-(-rows // nb), granule))


# --------------------------------------------------------------------------
# Kernels
# --------------------------------------------------------------------------
def _int_pow(v, g):
    """v**g for a small static positive-integer exponent (VPU multiplies)."""
    gi = int(g)
    assert gi == g and gi >= 1, "GAMMA must be a positive integer for this kernel"
    out = v
    for _ in range(gi - 1):
        out = out * v
    return out


def _focal_elementwise(x, t):
    # Cast happens here, in VMEM, so inputs stream from HBM in native dtype.
    x = x.astype(jnp.float32)
    t = t.astype(jnp.float32)
    omx = 1.0 - x
    loss = (-ALPHA) * _int_pow(omx, GAMMA) * t * jnp.log(x)
    if ALPHA != 1.0:   # statically elided for alpha == 1 (module default)
        loss = loss - (1.0 - ALPHA) * _int_pow(x, GAMMA) * (1.0 - t) * jnp.log(omx)
    # NOTE: x == 0 with t == 0 gives 0*log(0) = NaN, matching the PyTorch ref.
    return loss


def _row_mask(loss, rows, block_rows):
    """Zero rows past the valid extent (partial last block reads OOB rows)."""
    i = pl.program_id(0)
    ridx = i * block_rows + jax.lax.broadcasted_iota(jnp.int32, loss.shape, 0)
    return jnp.where(ridx < rows, loss, 0.0)


def _focal_elem_kernel(x_ref, t_ref, loss_ref):
    loss_ref[...] = _focal_elementwise(x_ref[...], t_ref[...]).astype(loss_ref.dtype)


def _focal_partial_sum_kernel(x_ref, t_ref, partial_ref, *, rows, block_rows,
                              mask_rows):
    """v7x path: one (1,128) per-lane partial per block ('parallel' grid)."""
    loss = _focal_elementwise(x_ref[...], t_ref[...])
    if mask_rows:
        loss = _row_mask(loss, rows, block_rows)
    partial_ref[...] = jnp.sum(loss, axis=0, keepdims=True)[None]


def _focal_sum_acc_kernel(x_ref, t_ref, out_ref, acc_ref, *, rows, block_rows,
                          mask_rows):
    """Single-TC path: resident per-lane accumulator, (1,1) result at the end."""
    i = pl.program_id(0)

    @pl.when(i == 0)
    def _():
        acc_ref[...] = jnp.zeros_like(acc_ref)

    loss = _focal_elementwise(x_ref[...], t_ref[...])
    if mask_rows:
        loss = _row_mask(loss, rows, block_rows)
    acc_ref[...] += jnp.sum(loss, axis=0, keepdims=True)

    @pl.when(i == pl.num_programs(0) - 1)
    def _():
        out_ref[...] = jnp.sum(acc_ref[...], keepdims=True)   # cross-lane -> (1,1)


# --------------------------------------------------------------------------
# Wrapper
# --------------------------------------------------------------------------
@functools.partial(jax.jit, static_argnames=("reduction",))
def focal_loss(inputs, targets, reduction=True):
    """Matches FocalLoss(alpha=1, gamma=3, reduction).forward(inputs, targets)."""
    assert inputs.shape == targets.shape
    orig_shape = inputs.shape
    n = 1
    for d in orig_shape:
        n *= int(d)

    # 64-bit types are not supported on TPU Pallas; everything else streams
    # through in its native dtype (bf16 / int8 / bool targets stay narrow).
    if jnp.dtype(inputs.dtype).itemsize > 4:
        inputs = inputs.astype(jnp.float32)
    if jnp.dtype(targets.dtype).itemsize > 4:
        targets = targets.astype(jnp.float32)
    out_dtype = (inputs.dtype if jnp.issubdtype(inputs.dtype, jnp.floating)
                 else jnp.float32)

    x = inputs.reshape(-1)
    t = targets.reshape(-1)

    tail = n % LANES          # sub-row remainder handled by a pure-JAX epilogue
    n_main = n - tail

    target_rows, multi_core = _chip_config()
    granule = _sublane_granule(x.dtype, t.dtype)

    if reduction:
        total = jnp.zeros((), jnp.float32)
        if n_main > 0:
            rows = n_main // LANES
            block_rows = _choose_block_rows(rows, target_rows, granule, multi_core)
            num_blocks = -(-rows // block_rows)
            mask_rows = (rows % block_rows) != 0   # partial last block
            xm = x if tail == 0 else x[:n_main]
            tm = t if tail == 0 else t[:n_main]
            x2 = xm.reshape(rows, LANES)
            t2 = tm.reshape(rows, LANES)
            in_specs = [pl.BlockSpec((block_rows, LANES), lambda i: (i, 0)),
                        pl.BlockSpec((block_rows, LANES), lambda i: (i, 0))]

            if multi_core:
                # v7x: per-block partials on a "parallel" axis (2 TensorCores).
                kern = functools.partial(_focal_partial_sum_kernel, rows=rows,
                                         block_rows=block_rows, mask_rows=mask_rows)
                partials = pl.pallas_call(
                    kern,
                    out_shape=jax.ShapeDtypeStruct((num_blocks, 1, LANES),
                                                   jnp.float32),
                    grid=(num_blocks,),
                    in_specs=in_specs,
                    out_specs=pl.BlockSpec((1, 1, LANES), lambda i: (i, 0, 0)),
                    compiler_params=pltpu.CompilerParams(
                        dimension_semantics=("parallel",)),
                )(x2, t2)
                total = total + jnp.sum(partials, dtype=jnp.float32)
            else:
                # v5e / v6e: in-kernel accumulation, single (1,1) result.
                kern = functools.partial(_focal_sum_acc_kernel, rows=rows,
                                         block_rows=block_rows, mask_rows=mask_rows)
                s = pl.pallas_call(
                    kern,
                    out_shape=jax.ShapeDtypeStruct((1, 1), jnp.float32),
                    grid=(num_blocks,),
                    in_specs=in_specs,
                    out_specs=pl.BlockSpec((1, 1), lambda i: (0, 0)),
                    scratch_shapes=[pltpu.VMEM((1, LANES), jnp.float32)],
                    compiler_params=pltpu.CompilerParams(
                        dimension_semantics=("arbitrary",)),
                )(x2, t2)
                total = total + s[0, 0]
        if tail > 0:
            total = total + jnp.sum(_focal_elementwise(x[n_main:], t[n_main:]),
                                    dtype=jnp.float32)
        return total / jnp.float32(n)

    # ---------------- reduction=False: elementwise loss ----------------
    pieces = []
    if n_main > 0:
        rows = n_main // LANES
        block_rows = _choose_block_rows(rows, target_rows, granule, multi_core)
        num_blocks = -(-rows // block_rows)
        xm = x if tail == 0 else x[:n_main]
        tm = t if tail == 0 else t[:n_main]
        x2 = xm.reshape(rows, LANES)
        t2 = tm.reshape(rows, LANES)
        loss2 = pl.pallas_call(
            _focal_elem_kernel,
            out_shape=jax.ShapeDtypeStruct((rows, LANES), out_dtype),
            grid=(num_blocks,),
            in_specs=[pl.BlockSpec((block_rows, LANES), lambda i: (i, 0)),
                      pl.BlockSpec((block_rows, LANES), lambda i: (i, 0))],
            out_specs=pl.BlockSpec((block_rows, LANES), lambda i: (i, 0)),
            compiler_params=pltpu.CompilerParams(
                dimension_semantics=("parallel",)),
        )(x2, t2)
        pieces.append(loss2.reshape(-1))
    if tail > 0:
        pieces.append(_focal_elementwise(x[n_main:], t[n_main:]).astype(out_dtype))
    flat = pieces[0] if len(pieces) == 1 else jnp.concatenate(pieces)
    return flat.reshape(orig_shape)


# --------------------------------------------------------------------------
# Reference + self-test
# --------------------------------------------------------------------------
def _focal_loss_ref(x, t, reduction=True):
    x = x.astype(jnp.float32)
    t = t.astype(jnp.float32)
    loss = (-ALPHA * (1.0 - x) ** GAMMA * t * jnp.log(x)
            - (1.0 - ALPHA) * x ** GAMMA * (1.0 - t) * jnp.log(1.0 - x))
    return jnp.mean(loss) if reduction else loss


if __name__ == "__main__":
    key = jax.random.PRNGKey(0)
    k1, k2, k3, k4 = jax.random.split(key, 4)

    # Main case: NCHW probability map + binary targets (discriminator use).
    shape = (2, 4, 16, 16)
    inputs = jax.random.uniform(k1, shape, jnp.float32, minval=0.01, maxval=0.99)
    targets = (jax.random.uniform(k2, shape, jnp.float32) > 0.5).astype(jnp.float32)

    out_mean = jax.block_until_ready(focal_loss(inputs, targets, reduction=True))
    out_elem = jax.block_until_ready(focal_loss(inputs, targets, reduction=False))
    ref_mean = _focal_loss_ref(inputs, targets, reduction=True)
    ref_elem = _focal_loss_ref(inputs, targets, reduction=False)
    assert jnp.allclose(out_mean, ref_mean, rtol=1e-5, atol=1e-6), (out_mean, ref_mean)
    assert jnp.allclose(out_elem, ref_elem, rtol=1e-5, atol=1e-6)

    # Narrow-dtype targets (bf16 0/1 values are exact): in-kernel cast path.
    targets_bf16 = targets.astype(jnp.bfloat16)
    out_mean_b = jax.block_until_ready(focal_loss(inputs, targets_bf16, reduction=True))
    out_elem_b = jax.block_until_ready(focal_loss(inputs, targets_bf16, reduction=False))
    assert jnp.allclose(out_mean_b, ref_mean, rtol=1e-5, atol=1e-6)
    assert jnp.allclose(out_elem_b, ref_elem, rtol=1e-5, atol=1e-6)

    # Odd, non-128-aligned size: partial last block + pure-JAX tail epilogue.
    shape2 = (3, 5, 7, 9)
    inputs2 = jax.random.uniform(k3, shape2, jnp.float32, minval=0.01, maxval=0.99)
    targets2 = (jax.random.uniform(k4, shape2, jnp.float32) > 0.5).astype(jnp.float32)
    out_mean2 = jax.block_until_ready(focal_loss(inputs2, targets2, reduction=True))
    out_elem2 = jax.block_until_ready(focal_loss(inputs2, targets2, reduction=False))
    assert jnp.allclose(out_mean2, _focal_loss_ref(inputs2, targets2, True),
                        rtol=1e-5, atol=1e-6)
    assert jnp.allclose(out_elem2, _focal_loss_ref(inputs2, targets2, False),
                        rtol=1e-5, atol=1e-6)

    print("KERNEL_OK")
</pallas_src>

<mosaic_0001>
module attributes {stable_mosaic.version = 11 : i64} {
  func.func @_focal_sum_acc_kernel(%arg0: i32, %arg1: memref<16x128xf32, #tpu.memory_space<vmem>>, %arg2: memref<16x128xf32, #tpu.memory_space<vmem>>, %arg3: memref<1x1xf32, #tpu.memory_space<vmem>>, %arg4: memref<1x128xf32, #tpu.memory_space<vmem>>) attributes {dimension_semantics = [#tpu.dimension_semantics<arbitrary>], iteration_bounds = array<i64: 1>, scalar_prefetch = 0 : i64, scratch_operands = 1 : i64, tpu.core_type = #tpu.core_type<tc>, window_params = [{transform_indices = @transform_0, window_bounds = array<i64: 16, 128>}, {transform_indices = @transform_1, window_bounds = array<i64: 16, 128>}, {pipeline_mode = #tpu.pipeline_mode<synchronous>, transform_indices = @transform_2, window_bounds = array<i64: 1, 1>}]} {
    %c0_i32 = arith.constant 0 : i32
    %0 = arith.cmpi eq, %arg0, %c0_i32 : i32
    %1 = arith.extui %0 : i1 to i32
    %c0_i32_0 = arith.constant 0 : i32
    %2 = arith.cmpi ne, %1, %c0_i32_0 : i32
    scf.if %2 {
      %cst_12 = arith.constant 0.000000e+00 : f32
      %22 = vector.broadcast %cst_12 : f32 to vector<1x128xf32>
      %c0_13 = arith.constant 0 : index
      %c0_14 = arith.constant 0 : index
      %23 = vector.load %arg4[%c0_13, %c0_14] : memref<1x128xf32, #tpu.memory_space<vmem>>, vector<1x128xf32>
      tpu.vector_store %arg4[%c0_13, %c0_14], %22 {strides = array<i32>} : memref<1x128xf32, #tpu.memory_space<vmem>>, vector<1x128xf32>,
    } else {
    }
    %c0 = arith.constant 0 : index
    %c0_1 = arith.constant 0 : index
    %3 = vector.load %arg1[%c0, %c0_1] : memref<16x128xf32, #tpu.memory_space<vmem>>, vector<16x128xf32>
    %c0_2 = arith.constant 0 : index
    %c0_3 = arith.constant 0 : index
    %4 = vector.load %arg2[%c0_2, %c0_3] : memref<16x128xf32, #tpu.memory_space<vmem>>, vector<16x128xf32>
    %cst = arith.constant 1.000000e+00 : f32
    %5 = vector.broadcast %cst : f32 to vector<16x128xf32>
    %6 = arith.subf %5, %3 : vector<16x128xf32>
    %7 = arith.mulf %6, %6 : vector<16x128xf32>
    %8 = arith.mulf %7, %6 : vector<16x128xf32>
    %cst_4 = arith.constant -1.000000e+00 : f32
    %9 = vector.broadcast %cst_4 : f32 to vector<16x128xf32>
    %10 = arith.mulf %9, %8 : vector<16x128xf32>
    %11 = arith.mulf %10, %4 : vector<16x128xf32>
    %12 = math.log %3 : vector<16x128xf32>
    %13 = arith.mulf %11, %12 : vector<16x128xf32>
    %c0_5 = arith.constant 0 : index
    %c0_6 = arith.constant 0 : index
    %14 = vector.load %arg4[%c0_5, %c0_6] : memref<1x128xf32, #tpu.memory_space<vmem>>, vector<1x128xf32>
    %cst_7 = arith.constant dense<0.000000e+00> : vector<128xf32>
    %15 = vector.multi_reduction <add>, %13, %cst_7 [0] : vector<16x128xf32> to vector<128xf32>
    %16 = vector.shape_cast %15 : vector<128xf32> to vector<1x128xf32>
    %17 = arith.addf %14, %16 : vector<1x128xf32>
    %c0_8 = arith.constant 0 : index
    %c0_9 = arith.constant 0 : index
    %18 = vector.load %arg4[%c0_8, %c0_9] : memref<1x128xf32, #tpu.memory_space<vmem>>, vector<1x128xf32>
    tpu.vector_store %arg4[%c0_8, %c0_9], %17 {strides = array<i32>} : memref<1x128xf32, #tpu.memory_space<vmem>>, vector<1x128xf32>,
    %c0_i32_10 = arith.constant 0 : i32
    %19 = arith.cmpi eq, %arg0, %c0_i32_10 : i32
    %20 = arith.extui %19 : i1 to i32
    %c0_i32_11 = arith.constant 0 : i32
    %21 = arith.cmpi ne, %20, %c0_i32_11 : i32
    scf.if %21 {
      %c0_12 = arith.constant 0 : index
      %c0_13 = arith.constant 0 : index
      %22 = vector.load %arg4[%c0_12, %c0_13] : memref<1x128xf32, #tpu.memory_space<vmem>>, vector<1x128xf32>
      %23 = vector.shape_cast %22 : vector<1x128xf32> to vector<1x1x128xf32>
      %cst_14 = arith.constant dense<0.000000e+00> : vector<1xf32>
      %24 = vector.multi_reduction <add>, %23, %cst_14 [1, 2] : vector<1x1x128xf32> to vector<1xf32>
      %25 = vector.shape_cast %24 : vector<1xf32> to vector<1x1x1xf32>
      %26 = vector.extract %25[0, 0, 0] : f32 from vector<1x1x1xf32>
      %27 = vector.broadcast %26 : f32 to vector<1x1xf32>
      %c0_15 = arith.constant 0 : index
      %c0_16 = arith.constant 0 : index
      %28 = vector.load %arg3[%c0_15, %c0_16] : memref<1x1xf32, #tpu.memory_space<vmem>>, vector<1x1xf32>
      tpu.vector_store %arg3[%c0_15, %c0_16], %27 {strides = array<i32>} : memref<1x1xf32, #tpu.memory_space<vmem>>, vector<1x1xf32>,
    } else {
    }
    return
  }
  func.func @transform_0(%arg0: i32) -> (i32, i32) {
    %c0_i32 = arith.constant 0 : i32
    %c0_i32_0 = arith.constant 0 : i32
    return %arg0, %c0_i32 : i32, i32
  }
  func.func @transform_1(%arg0: i32) -> (i32, i32) {
    %c0_i32 = arith.constant 0 : i32
    %c0_i32_0 = arith.constant 0 : i32
    return %arg0, %c0_i32 : i32, i32
  }
  func.func @transform_2(%arg0: i32) -> (i32, i32) {
    %c0_i32 = arith.constant 0 : i32
    %c0_i32_0 = arith.constant 0 : i32
    %c0_i32_1 = arith.constant 0 : i32
    return %c0_i32, %c0_i32_0 : i32, i32
  }
}

</mosaic_0001>

<bundles_post_ra>
// kernel: focal_loss.1
= control target key start
LH: loop header
LB: loop body
LE: loop exit
PB: predicated region body
PF: predicated region fallthrough
CT: control target
= control target key end

     0   :  { %v109_v2 = vmov 0.0   ;;  %s141_s0 = inlined_call_operand.vmem [shape: f32[16,128], index: 0, kind: input, shape index: {}]   ;;  %s142_s1 = inlined_call_operand.vmem [shape: f32[16,128], index: 1, kind: input, shape index: {}]   ;;  %s143_s2 = inlined_call_operand.hbm [shape: f32[1,1], index: 2, kind: output, shape index: {}]  }
   0x1   :  { %v17_v0 = vld [vmem:[%s141_s0] sm:$0xff]  ;;  %v18_v1 = vld [vmem:[%s141_s0 + $0x8] sm:$0xff]  ;;  %16 = vst [vmem:[#allocation2] sm:$0x1] %v109_v2 }
   0x2   :  { %v21_v3 = vsub.f32 1.0, %v17_v0  ;;  %v22_v4 = vsub.f32 1.0, %v18_v1  ;;  %83 = vlog2.f32 %v17_v0 }
   0x3   :  { %7 = vsyncpa [#allocation4], 0  ;;  %85 = vlog2.f32 %v18_v1  ;;  %v19_v10 = vld [vmem:[%s142_s1] sm:$0xff]  ;;  %v20_v12 = vld [vmem:[%s142_s1 + $0x8] sm:$0xff]  ;;  %vm51_vm0 = vcmask 1040384   ;;  %s110_s0 = smov [#allocation3]  }
   0x4   :  { %v23_v5 = vmul.f32 %v21_v3, %v21_v3  ;;  %v24_v6 = vmul.f32 %v22_v4, %v22_v4  ;;  %s71_s1 = sshll.u32 %s110_s0, 4  ;;  %vm63_vm1 = vcmask 0   ;;  %s72_s1 = int_to_ptr.vmem [resolvable:$true] %s71_s1 }
   0x5   :  { %s87_s18 = scalar_lea.vmem %s72_s1, 16  ;;  %s91_s19 = scalar_lea.vmem %s72_s1, 32 }
   0x6   :  { %v25_v7 = vmul.f32 %v23_v5, %v21_v3  ;;  %v26_v8 = vmul.f32 %v24_v6, %v22_v4  ;;  %p88_p0 = scmp.ne.s32.totalorder %s72_s1, %s87_s18  ;;  %p92_p1 = scmp.lt.s32.totalorder %s72_s1, %s72_s1 }
   0x7   :  { %p93_p2 = scmp.lt.s32.totalorder %s91_s19, %s87_s18 }
   0x8   :  { %v27_v9 = vmul.f32 -1.0, %v25_v7  ;;  %v28_v11 = vmul.f32 -1.0, %v26_v8  ;;  %v37_v27 = vld [vmem:[#allocation2] sm:$0x1] }
   0x9   :  { %p94_p3 = por %p93_p2, %p92_p1 }
   0xa   :  { %v29_v13 = vmul.f32 %v27_v9, %v19_v10  ;;  %v30_v15 = vmul.f32 %v28_v11, %v20_v12 }
   0xb   :  { %p95_p4 = pnand %p94_p3, %p88_p0 }
   0xf   :  { %v84_v14 = vpop.eup %83 }
  0x10   :  { %v86_v16 = vpop.eup %85  ;;  %v32_v17 = vmul.f32 0.6931472, %v84_v14 }
  0x11   :  { %v34_v18 = vmul.f32 0.6931472, %v86_v16 }
  0x12   :  { %v35_v19 = vmul.f32 %v32_v17, %v29_v13 }
  0x13   :  { %v36_v20 = vmul.f32 %v34_v18, %v30_v15 }
  0x15   :  { %v38_v21 = vadd.f32 %v36_v20, %v35_v19 }
  0x17   :  { %v39_v22 = vrot.slane %v38_v21, 4 }
  0x19   :  { %v40_v23 = vadd.f32 %v39_v22, %v38_v21 }
  0x1b   :  { %v41_v24 = vrot.slane %v40_v23, 2 }
  0x1d   :  { %v42_v25 = vadd.f32 %v41_v24, %v40_v23 }
  0x1f   :  { %v43_v26 = vrot.slane %v42_v25, 1 }
  0x21   :  { %v44_v28 = vadd.f32 %v43_v26, %v42_v25 }
  0x23   :  { %v45_v29 = vadd.f32 %v44_v28, %v37_v27 }
  0x25   :  { %46 = vst [vmem:[#allocation2] sm:$0x1] %v45_v29 }
  0x2c   :  { %v50_v30 = vld [vmem:[#allocation2] sm:$0x1] }
  0x2d   :  { %v52_v31 = vsel %vm51_vm0, %v50_v30, 0.0 }
  0x2e   :  { %53 = vadd.xlane.f32.xlu0 %v52_v31 }
  0xb7   :  { %v54_v32 = vpop.xlane.xlu0 %53 }
  0xb8   :  { %v55_v33 = vrot.slane %v54_v32, 4 }
  0xba   :  { %v56_v34 = vadd.f32 %v55_v33, %v54_v32 }
  0xbc   :  { %v57_v35 = vrot.slane %v56_v34, 2 }
  0xbe   :  { %v58_v36 = vadd.f32 %v57_v35, %v56_v34 }
  0xc0   :  { %v59_v37 = vrot.slane %v58_v36, 1 }
  0xc2   :  { %v60_v38 = vadd.f32 %v59_v37, %v58_v36 }
  0xc4   :  { %79 = vpush %v60_v38 }
  0xf5   :  { %s80_s17 = spop %79 }
  0xf6   :  { %v62_v39 = vstv %s80_s17 }
  0xf7   :  { %64 = vst.msk [vmem:[#allocation3] sm:$0x1] %vm63_vm1, %v62_v39 }
  0xf8   :  { %98 = shalt.err (!%p95_p4)
}
  0xf9   :  { %74 = dma.vmem_to_hbm [thread:$0]  %s72_s1, 16, %s143_s2, [#allocation4]  }
  0xfa   :  { %107 = dma.done.wait [#allocation4], 16  }
  0xfb   :  { %108 = vsyncadd [#allocation4], 4294967280 }
  0xfc   :  { %78 = vsyncpa [#allocation4], 1 }

</bundles_post_ra>
